<compile_context>
chip_gen: v6e
topology: v6e:2x2x1
jax: 0.10.0
libtpu: 0.0.40
codegen_flags: <defaults>
</compile_context>

<pallas_src>
import functools

import jax
import jax.numpy as jnp
from jax.experimental import pallas as pl
from jax.experimental.pallas import tpu as pltpu

# BlendParams defaults (pytorch3d.renderer.blending.BlendParams)
SIGMA = 1e-4
GAMMA = 1e-4
BACKGROUND = (1.0, 1.0, 1.0)
EPS = 1e-10
LANE = 128


def _softmax_rgb_blend_kernel(dist_ref, zbuf_ref, tex_ref, out_ref, *,
                              inv_sigma, inv_gamma, inv_zrange, zfar, background):
    """One (R, 128)-pixel tile.

    dist_ref, zbuf_ref : (K, R, 128) float32
    tex_ref            : (K, 3, R, 128) bfloat16
    out_ref            : (4, R, 128) float32 RGBA
    """
    K = dist_ref.shape[0]

    zbuf = zbuf_ref[...]                                           # (K, R, 128)
    dists = dist_ref[...]                                          # (K, R, 128)

    # PyTorch3D sets zbuf = -1 exactly where pix_to_face < 0 (the wrapper enforces
    # this), so the coverage mask is derived here and pix_to_face is never DMA'd in.
    mask = (zbuf >= 0.0).astype(jnp.float32)                       # (K, R, 128)

    prob = jax.nn.sigmoid(dists * (-inv_sigma)) * mask             # (K, R, 128)
    z_inv = (zfar - zbuf) * inv_zrange * mask                      # (K, R, 128)

    # K sits on a leading, non-tiled block dim, so these K-reductions are plain
    # elementwise VPU combines of full (R,128)-aligned slices (no sublane extracts /
    # XLU work) -- the short static unroll is codegen-equivalent to jnp.prod/max/sum.
    one_m = 1.0 - prob
    alpha = one_m[0:1]
    z_max = z_inv[0:1]
    for k in range(1, K):
        alpha = alpha * one_m[k:k + 1]
        z_max = jnp.maximum(z_max, z_inv[k:k + 1])
    z_max = jnp.maximum(z_max, EPS)                                # (1, R, 128)

    w_num = prob * jnp.exp((z_inv - z_max) * inv_gamma)            # (K, R, 128)
    delta = jnp.maximum(jnp.exp((EPS - z_max) * inv_gamma), EPS)   # (1, R, 128)

    denom = delta
    for k in range(K):
        denom = denom + w_num[k:k + 1]                             # (1, R, 128)
    inv_denom = pl.reciprocal(denom, approx=True)                  # one EUP rcp, no divides
    weights = w_num * inv_denom                                    # (K, R, 128)

    # Weighted texel sum; texels are loaded per-k as bf16 and upcast in registers.
    rgb = weights[0:1] * tex_ref[0].astype(jnp.float32)            # (3, R, 128)
    for k in range(1, K):
        rgb = rgb + weights[k:k + 1] * tex_ref[k].astype(jnp.float32)

    # Background color baked in as compile-time scalars (no extra input stream).
    s = delta * inv_denom                                          # (1, R, 128)
    rgb = rgb + jnp.concatenate(
        [s * background[0], s * background[1], s * background[2]], axis=0)

    # Single lane-dense full-block store.
    out_ref[...] = jnp.concatenate([rgb, 1.0 - alpha], axis=0)     # (4, R, 128)


def _to_lane_layout(x_kp, rows_pad, pad_value=0.0):
    """(K, P) -> (K, rows_pad, 128): pixel axis split onto (row, lane)."""
    K, P = x_kp.shape
    pad = rows_pad * LANE - P
    if pad:
        x_kp = jnp.pad(x_kp, ((0, 0), (0, pad)), constant_values=pad_value)
    return x_kp.reshape(K, rows_pad, LANE)


def softmax_rgb_blend_pallas(pix_to_face, dists, zbuf, texels,
                             sigma=SIGMA, gamma=GAMMA, background=BACKGROUND,
                             znear=1.0, zfar=100.0, rows_per_step=256):
    """texels: (N,H,W,K,3); pix_to_face/dists/zbuf: (N,H,W,K).  Returns (N,H,W,4) f32."""
    N, H, W, K = dists.shape
    P = N * H * W

    rows = pl.cdiv(P, LANE)                 # number of 128-pixel lane rows
    rows_aligned = ((rows + 15) // 16) * 16
    # rows per grid step: multiple of 16 (bf16 sublane packing), default 256 -> 32768 px.
    R = max(16, (min(int(rows_per_step), rows_aligned) // 16) * 16)
    rows_pad = pl.cdiv(rows, R) * R

    # Layout glue: pixels -> (row, lane); K / 3 on leading non-tiled dims.  The mask is
    # folded into zbuf's sentinel and texels are downcast to bf16 before the transpose.
    # TODO(synk): ideally the rasterizer / texture sampler would emit these layouts (and
    # the fused texel gather) directly, skipping this extra XLA transpose pass over HBM.
    zbuf_s = jnp.where(pix_to_face >= 0, zbuf, -1.0).astype(jnp.float32)
    d_k = _to_lane_layout(dists.reshape(P, K).T.astype(jnp.float32), rows_pad)
    z_k = _to_lane_layout(zbuf_s.reshape(P, K).T, rows_pad, pad_value=-1.0)
    tex = jnp.transpose(texels.astype(jnp.bfloat16).reshape(P, K, 3), (1, 2, 0))  # (K,3,P)
    pad = rows_pad * LANE - P
    if pad:
        tex = jnp.pad(tex, ((0, 0), (0, 0), (0, pad)))
    tex_k = tex.reshape(K, 3, rows_pad, LANE)

    kern = functools.partial(
        _softmax_rgb_blend_kernel,
        inv_sigma=1.0 / float(sigma),
        inv_gamma=1.0 / float(gamma),
        inv_zrange=1.0 / (float(zfar) - float(znear)),
        zfar=float(zfar),
        background=tuple(float(c) for c in background))

    out = pl.pallas_call(
        kern,
        out_shape=jax.ShapeDtypeStruct((4, rows_pad, LANE), jnp.float32),
        grid=(rows_pad // R,),
        in_specs=[
            pl.BlockSpec((K, R, LANE), lambda i: (0, i, 0)),        # dists
            pl.BlockSpec((K, R, LANE), lambda i: (0, i, 0)),        # zbuf (sentinel mask)
            pl.BlockSpec((K, 3, R, LANE), lambda i: (0, 0, i, 0)),  # texels (bf16)
        ],
        out_specs=pl.BlockSpec((4, R, LANE), lambda i: (0, i, 0)),
        compiler_params=pltpu.CompilerParams(
            dimension_semantics=("parallel",),
            vmem_limit_bytes=32 * 1024 * 1024),
    )(d_k, z_k, tex_k)

    images = out.reshape(4, rows_pad * LANE)[:, :P].T.reshape(N, H, W, 4)
    return images


def sample_textures_vertex(pix_to_face, bary_coords, faces, verts_colors):
    """Plain-JAX glue equivalent of meshes.sample_textures(fragments) for TexturesVertex.

    pix_to_face: (N,H,W,K) int; bary_coords: (N,H,W,K,3);
    faces: (F,3) int; verts_colors: (V,3).  Returns texels (N,H,W,K,3).
    """
    # TODO(synk): full PyTorch3D Meshes/TexturesUV sampling is a ragged mesh gather with
    # no clean Pallas equivalent; vertex-color barycentric interpolation implemented here.
    idx = jnp.clip(pix_to_face, 0)                         # (N,H,W,K)
    face_verts = faces[idx]                                # (N,H,W,K,3)
    face_colors = verts_colors[face_verts]                 # (N,H,W,K,3,3)
    return jnp.sum(bary_coords[..., None] * face_colors, axis=-2)


def softmax_rgb_blend_ref(texels, pix_to_face, dists, zbuf,
                          sigma=SIGMA, gamma=GAMMA, background=BACKGROUND,
                          znear=1.0, zfar=100.0):
    """Pure-JAX reference mirroring pytorch3d.renderer.blending.softmax_rgb_blend."""
    mask = (pix_to_face >= 0).astype(jnp.float32)
    prob = jax.nn.sigmoid(-dists / sigma) * mask
    alpha = jnp.prod(1.0 - prob, axis=-1)
    z_inv = (zfar - zbuf) / (zfar - znear) * mask
    z_max = jnp.maximum(jnp.max(z_inv, axis=-1, keepdims=True), EPS)
    w_num = prob * jnp.exp((z_inv - z_max) / gamma)
    delta = jnp.maximum(jnp.exp((EPS - z_max) / gamma), EPS)
    denom = jnp.sum(w_num, axis=-1, keepdims=True) + delta
    weights = w_num / denom
    rgb = jnp.sum(weights[..., None] * texels, axis=-2) + (delta / denom) * jnp.asarray(background)
    return jnp.concatenate([rgb, (1.0 - alpha)[..., None]], axis=-1)


class SoftSimpleShaderPallas:
    """JAX/Pallas equivalent of SoftSimpleShader.forward."""

    def __init__(self, sigma=SIGMA, gamma=GAMMA, background=BACKGROUND,
                 znear=1.0, zfar=100.0):
        self.sigma, self.gamma = sigma, gamma
        self.background = background
        self.znear, self.zfar = znear, zfar

    def __call__(self, pix_to_face, bary_coords, dists, zbuf, faces, verts_colors):
        texels = sample_textures_vertex(pix_to_face, bary_coords, faces, verts_colors)
        return softmax_rgb_blend_pallas(pix_to_face, dists, zbuf, texels,
                                        sigma=self.sigma, gamma=self.gamma,
                                        background=self.background,
                                        znear=self.znear, zfar=self.zfar)


if __name__ == "__main__":
    key = jax.random.PRNGKey(0)

    # --- Test 1: small end-to-end shader (gather + blend) ---
    N, H, W, K = 2, 16, 16, 4          # small "fragments" shapes
    F_faces, V_verts = 20, 12          # small synthetic mesh
    k1, k2, k3, k4, k5, k6 = jax.random.split(key, 6)

    faces = jax.random.randint(k1, (F_faces, 3), 0, V_verts, dtype=jnp.int32)
    verts_colors = jax.random.uniform(k2, (V_verts, 3), dtype=jnp.float32)

    pix_to_face = jax.random.randint(k3, (N, H, W, K), -1, F_faces, dtype=jnp.int32)
    bary = jax.random.uniform(k4, (N, H, W, K, 3), dtype=jnp.float32) + 1e-3
    bary = bary / jnp.sum(bary, axis=-1, keepdims=True)
    dists = jax.random.normal(k5, (N, H, W, K), dtype=jnp.float32) * 1e-4
    zbuf = jax.random.uniform(k6, (N, H, W, K), dtype=jnp.float32, minval=1.0, maxval=10.0)
    zbuf = jnp.where(pix_to_face >= 0, zbuf, -1.0)

    shader = SoftSimpleShaderPallas()
    fwd = jax.jit(lambda *a: shader(*a))
    images = jax.block_until_ready(fwd(pix_to_face, bary, dists, zbuf, faces, verts_colors))

    texels = sample_textures_vertex(pix_to_face, bary, faces, verts_colors)
    ref = softmax_rgb_blend_ref(texels, pix_to_face, dists, zbuf)
    assert images.shape == (N, H, W, 4) and images.dtype == jnp.float32
    # bf16 texels + approximate reciprocal -> slightly looser tolerance than pure f32.
    assert jnp.allclose(images, ref, rtol=2e-2, atol=2e-2), \
        float(jnp.max(jnp.abs(images - ref)))

    # --- Test 2: exercise the multi-grid-step path (grid > 1) ---
    N2, H2, W2 = 1, 64, 64
    k7, k8, k9, k10 = jax.random.split(jax.random.PRNGKey(1), 4)
    p2f2 = jax.random.randint(k7, (N2, H2, W2, K), -1, F_faces, dtype=jnp.int32)
    dists2 = jax.random.normal(k8, (N2, H2, W2, K), dtype=jnp.float32) * 1e-4
    zbuf2 = jax.random.uniform(k9, (N2, H2, W2, K), dtype=jnp.float32, minval=1.0, maxval=10.0)
    zbuf2 = jnp.where(p2f2 >= 0, zbuf2, -1.0)
    tex2 = jax.random.uniform(k10, (N2, H2, W2, K, 3), dtype=jnp.float32)

    out2 = jax.block_until_ready(
        softmax_rgb_blend_pallas(p2f2, dists2, zbuf2, tex2, rows_per_step=16))
    ref2 = softmax_rgb_blend_ref(tex2, p2f2, dists2, zbuf2)
    assert jnp.allclose(out2, ref2, rtol=2e-2, atol=2e-2), \
        float(jnp.max(jnp.abs(out2 - ref2)))

    print("KERNEL_OK")
</pallas_src>

<mosaic_0001>
module attributes {stable_mosaic.version = 11 : i64} {
  func.func @_softmax_rgb_blend_kernel(%arg0: i32, %arg1: memref<4x16x128xf32, #tpu.memory_space<vmem>>, %arg2: memref<4x16x128xf32, #tpu.memory_space<vmem>>, %arg3: memref<4x3x16x128xbf16, #tpu.memory_space<vmem>>, %arg4: memref<4x16x128xf32, #tpu.memory_space<vmem>>) attributes {dimension_semantics = [#tpu.dimension_semantics<parallel>], iteration_bounds = array<i64: 1>, scalar_prefetch = 0 : i64, scratch_operands = 0 : i64, tpu.core_type = #tpu.core_type<tc>, window_params = [{transform_indices = @transform_0, window_bounds = array<i64: 4, 16, 128>}, {transform_indices = @transform_1, window_bounds = array<i64: 4, 16, 128>}, {transform_indices = @transform_2, window_bounds = array<i64: 4, 3, 16, 128>}, {transform_indices = @transform_3, window_bounds = array<i64: 4, 16, 128>}]} {
    %c0 = arith.constant 0 : index
    %c0_0 = arith.constant 0 : index
    %c0_1 = arith.constant 0 : index
    %0 = vector.load %arg2[%c0, %c0_0, %c0_1] : memref<4x16x128xf32, #tpu.memory_space<vmem>>, vector<4x16x128xf32>
    %c0_2 = arith.constant 0 : index
    %c0_3 = arith.constant 0 : index
    %c0_4 = arith.constant 0 : index
    %1 = vector.load %arg1[%c0_2, %c0_3, %c0_4] : memref<4x16x128xf32, #tpu.memory_space<vmem>>, vector<4x16x128xf32>
    %cst = arith.constant 0.000000e+00 : f32
    %2 = vector.broadcast %cst : f32 to vector<4x16x128xf32>
    %3 = arith.cmpf oge, %0, %2 : vector<4x16x128xf32>
    %4 = arith.extui %3 : vector<4x16x128xi1> to vector<4x16x128xi32>
    %5 = arith.sitofp %4 : vector<4x16x128xi32> to vector<4x16x128xf32>
    %cst_5 = arith.constant -1.000000e+04 : f32
    %6 = vector.broadcast %cst_5 : f32 to vector<4x16x128xf32>
    %7 = arith.mulf %1, %6 : vector<4x16x128xf32>
    %8 = arith.negf %7 : vector<4x16x128xf32>
    %9 = math.exp %8 : vector<4x16x128xf32>
    %cst_6 = arith.constant 1.000000e+00 : f32
    %10 = vector.broadcast %cst_6 : f32 to vector<4x16x128xf32>
    %11 = arith.addf %10, %9 : vector<4x16x128xf32>
    %12 = arith.divf %10, %11 : vector<4x16x128xf32>
    %13 = arith.mulf %12, %5 : vector<4x16x128xf32>
    %cst_7 = arith.constant 1.000000e+02 : f32
    %14 = vector.broadcast %cst_7 : f32 to vector<4x16x128xf32>
    %15 = arith.subf %14, %0 : vector<4x16x128xf32>
    %cst_8 = arith.constant 0.0101010101 : f32
    %16 = vector.broadcast %cst_8 : f32 to vector<4x16x128xf32>
    %17 = arith.mulf %15, %16 : vector<4x16x128xf32>
    %18 = arith.mulf %17, %5 : vector<4x16x128xf32>
    %cst_9 = arith.constant 1.000000e+00 : f32
    %19 = vector.broadcast %cst_9 : f32 to vector<4x16x128xf32>
    %20 = arith.subf %19, %13 : vector<4x16x128xf32>
    %21 = vector.extract_strided_slice %20 {offsets = [0, 0, 0], sizes = [1, 16, 128], strides = [1, 1, 1]} : vector<4x16x128xf32> to vector<1x16x128xf32>
    %22 = vector.extract_strided_slice %18 {offsets = [0, 0, 0], sizes = [1, 16, 128], strides = [1, 1, 1]} : vector<4x16x128xf32> to vector<1x16x128xf32>
    %23 = vector.extract_strided_slice %20 {offsets = [1, 0, 0], sizes = [1, 16, 128], strides = [1, 1, 1]} : vector<4x16x128xf32> to vector<1x16x128xf32>
    %24 = arith.mulf %21, %23 : vector<1x16x128xf32>
    %25 = vector.extract_strided_slice %18 {offsets = [1, 0, 0], sizes = [1, 16, 128], strides = [1, 1, 1]} : vector<4x16x128xf32> to vector<1x16x128xf32>
    %26 = arith.maximumf %22, %25 : vector<1x16x128xf32>
    %27 = vector.extract_strided_slice %20 {offsets = [2, 0, 0], sizes = [1, 16, 128], strides = [1, 1, 1]} : vector<4x16x128xf32> to vector<1x16x128xf32>
    %28 = arith.mulf %24, %27 : vector<1x16x128xf32>
    %29 = vector.extract_strided_slice %18 {offsets = [2, 0, 0], sizes = [1, 16, 128], strides = [1, 1, 1]} : vector<4x16x128xf32> to vector<1x16x128xf32>
    %30 = arith.maximumf %26, %29 : vector<1x16x128xf32>
    %31 = vector.extract_strided_slice %20 {offsets = [3, 0, 0], sizes = [1, 16, 128], strides = [1, 1, 1]} : vector<4x16x128xf32> to vector<1x16x128xf32>
    %32 = arith.mulf %28, %31 : vector<1x16x128xf32>
    %33 = vector.extract_strided_slice %18 {offsets = [3, 0, 0], sizes = [1, 16, 128], strides = [1, 1, 1]} : vector<4x16x128xf32> to vector<1x16x128xf32>
    %34 = arith.maximumf %30, %33 : vector<1x16x128xf32>
    %cst_10 = arith.constant 1.000000e-10 : f32
    %35 = vector.broadcast %cst_10 : f32 to vector<1x16x128xf32>
    %36 = arith.maximumf %34, %35 : vector<1x16x128xf32>
    %37 = vector.broadcast %36 : vector<1x16x128xf32> to vector<4x16x128xf32>
    %38 = arith.subf %18, %37 : vector<4x16x128xf32>
    %cst_11 = arith.constant 1.000000e+04 : f32
    %39 = vector.broadcast %cst_11 : f32 to vector<4x16x128xf32>
    %40 = arith.mulf %38, %39 : vector<4x16x128xf32>
    %41 = math.exp %40 : vector<4x16x128xf32>
    %42 = arith.mulf %13, %41 : vector<4x16x128xf32>
    %cst_12 = arith.constant 1.000000e-10 : f32
    %43 = vector.broadcast %cst_12 : f32 to vector<1x16x128xf32>
    %44 = arith.subf %43, %36 : vector<1x16x128xf32>
    %cst_13 = arith.constant 1.000000e+04 : f32
    %45 = vector.broadcast %cst_13 : f32 to vector<1x16x128xf32>
    %46 = arith.mulf %44, %45 : vector<1x16x128xf32>
    %47 = math.exp %46 : vector<1x16x128xf32>
    %cst_14 = arith.constant 1.000000e-10 : f32
    %48 = vector.broadcast %cst_14 : f32 to vector<1x16x128xf32>
    %49 = arith.maximumf %47, %48 : vector<1x16x128xf32>
    %50 = vector.extract_strided_slice %42 {offsets = [0, 0, 0], sizes = [1, 16, 128], strides = [1, 1, 1]} : vector<4x16x128xf32> to vector<1x16x128xf32>
    %51 = arith.addf %49, %50 : vector<1x16x128xf32>
    %52 = vector.extract_strided_slice %42 {offsets = [1, 0, 0], sizes = [1, 16, 128], strides = [1, 1, 1]} : vector<4x16x128xf32> to vector<1x16x128xf32>
    %53 = arith.addf %51, %52 : vector<1x16x128xf32>
    %54 = vector.extract_strided_slice %42 {offsets = [2, 0, 0], sizes = [1, 16, 128], strides = [1, 1, 1]} : vector<4x16x128xf32> to vector<1x16x128xf32>
    %55 = arith.addf %53, %54 : vector<1x16x128xf32>
    %56 = vector.extract_strided_slice %42 {offsets = [3, 0, 0], sizes = [1, 16, 128], strides = [1, 1, 1]} : vector<4x16x128xf32> to vector<1x16x128xf32>
    %57 = arith.addf %55, %56 : vector<1x16x128xf32>
    %58 = tpu.reciprocal %57 {approx = true} : vector<1x16x128xf32> -> vector<1x16x128xf32>
    %59 = vector.broadcast %58 : vector<1x16x128xf32> to vector<4x16x128xf32>
    %60 = arith.mulf %42, %59 : vector<4x16x128xf32>
    %61 = vector.extract_strided_slice %60 {offsets = [0, 0, 0], sizes = [1, 16, 128], strides = [1, 1, 1]} : vector<4x16x128xf32> to vector<1x16x128xf32>
    %c0_15 = arith.constant 0 : index
    %c0_16 = arith.constant 0 : index
    %c0_17 = arith.constant 0 : index
    %c0_18 = arith.constant 0 : index
    %62 = vector.load %arg3[%c0_15, %c0_16, %c0_17, %c0_18] : memref<4x3x16x128xbf16, #tpu.memory_space<vmem>>, vector<1x3x16x128xbf16>
    %63 = vector.shape_cast %62 : vector<1x3x16x128xbf16> to vector<3x16x128xbf16>
    %64 = arith.extf %63 : vector<3x16x128xbf16> to vector<3x16x128xf32>
    %65 = vector.broadcast %61 : vector<1x16x128xf32> to vector<3x16x128xf32>
    %66 = arith.mulf %65, %64 : vector<3x16x128xf32>
    %67 = vector.extract_strided_slice %60 {offsets = [1, 0, 0], sizes = [1, 16, 128], strides = [1, 1, 1]} : vector<4x16x128xf32> to vector<1x16x128xf32>
    %c1 = arith.constant 1 : index
    %c0_19 = arith.constant 0 : index
    %c0_20 = arith.constant 0 : index
    %c0_21 = arith.constant 0 : index
    %68 = vector.load %arg3[%c1, %c0_19, %c0_20, %c0_21] : memref<4x3x16x128xbf16, #tpu.memory_space<vmem>>, vector<1x3x16x128xbf16>
    %69 = vector.shape_cast %68 : vector<1x3x16x128xbf16> to vector<3x16x128xbf16>
    %70 = arith.extf %69 : vector<3x16x128xbf16> to vector<3x16x128xf32>
    %71 = vector.broadcast %67 : vector<1x16x128xf32> to vector<3x16x128xf32>
    %72 = arith.mulf %71, %70 : vector<3x16x128xf32>
    %73 = arith.addf %66, %72 : vector<3x16x128xf32>
    %74 = vector.extract_strided_slice %60 {offsets = [2, 0, 0], sizes = [1, 16, 128], strides = [1, 1, 1]} : vector<4x16x128xf32> to vector<1x16x128xf32>
    %c2 = arith.constant 2 : index
    %c0_22 = arith.constant 0 : index
    %c0_23 = arith.constant 0 : index
    %c0_24 = arith.constant 0 : index
    %75 = vector.load %arg3[%c2, %c0_22, %c0_23, %c0_24] : memref<4x3x16x128xbf16, #tpu.memory_space<vmem>>, vector<1x3x16x128xbf16>
    %76 = vector.shape_cast %75 : vector<1x3x16x128xbf16> to vector<3x16x128xbf16>
    %77 = arith.extf %76 : vector<3x16x128xbf16> to vector<3x16x128xf32>
    %78 = vector.broadcast %74 : vector<1x16x128xf32> to vector<3x16x128xf32>
    %79 = arith.mulf %78, %77 : vector<3x16x128xf32>
    %80 = arith.addf %73, %79 : vector<3x16x128xf32>
    %81 = vector.extract_strided_slice %60 {offsets = [3, 0, 0], sizes = [1, 16, 128], strides = [1, 1, 1]} : vector<4x16x128xf32> to vector<1x16x128xf32>
    %c3 = arith.constant 3 : index
    %c0_25 = arith.constant 0 : index
    %c0_26 = arith.constant 0 : index
    %c0_27 = arith.constant 0 : index
    %82 = vector.load %arg3[%c3, %c0_25, %c0_26, %c0_27] : memref<4x3x16x128xbf16, #tpu.memory_space<vmem>>, vector<1x3x16x128xbf16>
    %83 = vector.shape_cast %82 : vector<1x3x16x128xbf16> to vector<3x16x128xbf16>
    %84 = arith.extf %83 : vector<3x16x128xbf16> to vector<3x16x128xf32>
    %85 = vector.broadcast %81 : vector<1x16x128xf32> to vector<3x16x128xf32>
    %86 = arith.mulf %85, %84 : vector<3x16x128xf32>
    %87 = arith.addf %80, %86 : vector<3x16x128xf32>
    %88 = arith.mulf %49, %58 : vector<1x16x128xf32>
    %cst_28 = arith.constant 1.000000e+00 : f32
    %89 = vector.broadcast %cst_28 : f32 to vector<1x16x128xf32>
    %90 = arith.mulf %88, %89 : vector<1x16x128xf32>
    %cst_29 = arith.constant 1.000000e+00 : f32
    %91 = vector.broadcast %cst_29 : f32 to vector<1x16x128xf32>
    %92 = arith.mulf %88, %91 : vector<1x16x128xf32>
    %cst_30 = arith.constant 1.000000e+00 : f32
    %93 = vector.broadcast %cst_30 : f32 to vector<1x16x128xf32>
    %94 = arith.mulf %88, %93 : vector<1x16x128xf32>
    %95 = tpu.concatenate %90, %92, %94 in 0 : vector<1x16x128xf32>, vector<1x16x128xf32>, vector<1x16x128xf32> -> vector<3x16x128xf32>
    %96 = arith.addf %87, %95 : vector<3x16x128xf32>
    %cst_31 = arith.constant 1.000000e+00 : f32
    %97 = vector.broadcast %cst_31 : f32 to vector<1x16x128xf32>
    %98 = arith.subf %97, %32 : vector<1x16x128xf32>
    %99 = tpu.concatenate %96, %98 in 0 : vector<3x16x128xf32>, vector<1x16x128xf32> -> vector<4x16x128xf32>
    %c0_32 = arith.constant 0 : index
    %c0_33 = arith.constant 0 : index
    %c0_34 = arith.constant 0 : index
    %100 = vector.load %arg4[%c0_32, %c0_33, %c0_34] : memref<4x16x128xf32, #tpu.memory_space<vmem>>, vector<4x16x128xf32>
    tpu.vector_store %arg4[%c0_32, %c0_33, %c0_34], %99 {strides = array<i32>} : memref<4x16x128xf32, #tpu.memory_space<vmem>>, vector<4x16x128xf32>,
    return
  }
  func.func @transform_0(%arg0: i32) -> (i32, i32, i32) {
    %c0_i32 = arith.constant 0 : i32
    %c0_i32_0 = arith.constant 0 : i32
    %c0_i32_1 = arith.constant 0 : i32
    return %c0_i32, %arg0, %c0_i32_0 : i32, i32, i32
  }
  func.func @transform_1(%arg0: i32) -> (i32, i32, i32) {
    %c0_i32 = arith.constant 0 : i32
    %c0_i32_0 = arith.constant 0 : i32
    %c0_i32_1 = arith.constant 0 : i32
    return %c0_i32, %arg0, %c0_i32_0 : i32, i32, i32
  }
  func.func @transform_2(%arg0: i32) -> (i32, i32, i32, i32) {
    %c0_i32 = arith.constant 0 : i32
    %c0_i32_0 = arith.constant 0 : i32
    %c0_i32_1 = arith.constant 0 : i32
    %c0_i32_2 = arith.constant 0 : i32
    return %c0_i32, %c0_i32_0, %arg0, %c0_i32_1 : i32, i32, i32, i32
  }
  func.func @transform_3(%arg0: i32) -> (i32, i32, i32) {
    %c0_i32 = arith.constant 0 : i32
    %c0_i32_0 = arith.constant 0 : i32
    %c0_i32_1 = arith.constant 0 : i32
    return %c0_i32, %arg0, %c0_i32_0 : i32, i32, i32
  }
}

</mosaic_0001>

<bundles_post_ra>
// kernel: _lambda_.1
= control target key start
LH: loop header
LB: loop body
LE: loop exit
PB: predicated region body
PF: predicated region fallthrough
CT: control target
= control target key end

     0   :  { %v497_v8 = vmov 0.0   ;;  %s758_s0 = inlined_call_operand.vmem [shape: f32[4,16,128], index: 0, kind: input, shape index: {}]   ;;  %s759_s1 = inlined_call_operand.vmem [shape: f32[4,16,128], index: 1, kind: input, shape index: {}]   ;;  %s760_s3 = inlined_call_operand.vmem [shape: f32[4,16,128], index: 3, kind: output, shape index: {}]   ;;  %s761_s2 = inlined_call_operand.vmem [shape: bf16[4,3,16,128], index: 2, kind: input, shape index: {}]  }
   0x1   :  { %v14_v0 = vld [vmem:[%s759_s1] sm:$0xff]  ;;  %v16_v1 = vld [vmem:[%s759_s1 + $0x10] sm:$0xff]  ;;  %v15_v30 = vld [vmem:[%s759_s1 + $0x8] sm:$0xff] }
   0x2   :  { %v18_v2 = vld [vmem:[%s759_s1 + $0x20] sm:$0xff]  ;;  %v20_v3 = vld [vmem:[%s759_s1 + $0x30] sm:$0xff]  ;;  %vm30_vm0 = vcmp.ge.f32.partialorder %v14_v0, 0.0  ;;  %vm32_vm1 = vcmp.ge.f32.partialorder %v16_v1, 0.0  ;;  %v118_v15 = vsub.f32 100.0, %v14_v0  ;;  %v120_v16 = vsub.f32 100.0, %v16_v1 }
   0x3   :  { %v22_v4 = vld [vmem:[%s758_s0] sm:$0xff]  ;;  %v24_v5 = vld [vmem:[%s758_s0 + $0x10] sm:$0xff]  ;;  %vm34_vm2 = vcmp.ge.f32.partialorder %v18_v2, 0.0  ;;  %vm36_vm3 = vcmp.ge.f32.partialorder %v20_v3, 0.0  ;;  %v543_v9 = vsel %vm30_vm0, 1.0, %v497_v8  ;;  %v546_v10 = vsel %vm32_vm1, 1.0, %v497_v8 }
   0x4   :  { %v26_v6 = vld [vmem:[%s758_s0 + $0x20] sm:$0xff]  ;;  %v28_v7 = vld [vmem:[%s758_s0 + $0x30] sm:$0xff]  ;;  %v355_v11 = vmul.f32 10000.0, %v22_v4  ;;  %v357_v12 = vmul.f32 10000.0, %v24_v5  ;;  %v122_v17 = vsub.f32 100.0, %v18_v2  ;;  %v549_v21 = vsel %vm34_vm2, 1.0, %v497_v8 }
   0x5   :  { %v359_v13 = vmul.f32 10000.0, %v26_v6  ;;  %v361_v14 = vmul.f32 10000.0, %v28_v7  ;;  %v124_v23 = vsub.f32 100.0, %v20_v3  ;;  %v126_v24 = vmul.f32 0.01010101, %v118_v15  ;;  %v17_v31 = vld [vmem:[%s759_s1 + $0x18] sm:$0xff] }
   0x6   :  { %v70_v18 = vmul.f32 1.442695, %v355_v11  ;;  %v74_v19 = vmul.f32 1.442695, %v357_v12  ;;  %v128_v25 = vmul.f32 0.01010101, %v120_v16 }
   0x7   :  { %v78_v20 = vmul.f32 1.442695, %v359_v13  ;;  %v82_v22 = vmul.f32 1.442695, %v361_v14  ;;  %v130_v26 = vmul.f32 0.01010101, %v122_v17  ;;  %v134_v29 = vmul.f32 %v543_v9, %v126_v24 }
   0x8   :  { %441 = vpow2.f32 %v70_v18  ;;  %v553_v27 = vsel %vm36_vm3, 1.0, %v497_v8  ;;  %v132_v28 = vmul.f32 0.01010101, %v124_v23  ;;  %v136_v32 = vmul.f32 %v546_v10, %v128_v25  ;;  %v19_v34 = vld [vmem:[%s759_s1 + $0x28] sm:$0xff]  ;;  %v25_v36 = vld [vmem:[%s758_s0 + $0x18] sm:$0xff] }
   0x9   :  { %443 = vpow2.f32 %v74_v19  ;;  %v138_v33 = vmul.f32 %v549_v21, %v130_v26  ;;  %v23_v35 = vld [vmem:[%s758_s0 + $0x8] sm:$0xff]  ;;  %vm31_vm4 = vcmp.ge.f32.partialorder %v15_v30, 0.0  ;;  %v21_v37 = vld [vmem:[%s759_s1 + $0x38] sm:$0xff]  ;;  %vm33_vm5 = vcmp.ge.f32.partialorder %v17_v31, 0.0 }
   0xa   :  { %445 = vpow2.f32 %v78_v20  ;;  %v27_v38 = vld [vmem:[%s758_s0 + $0x28] sm:$0xff]  ;;  %v29_v39 = vld [vmem:[%s758_s0 + $0x38] sm:$0xff]  ;;  %vm35_vm6 = vcmp.ge.f32.partialorder %v19_v34, 0.0  ;;  %v140_v40 = vmul.f32 %v553_v27, %v132_v28  ;;  %v152_v41 = vmax.f32 %v134_v29, %v136_v32 }
   0xb   :  { %447 = vpow2.f32 %v82_v22  ;;  %vm37_vm7 = vcmp.ge.f32.partialorder %v21_v37, 0.0  ;;  %v584_v42 = vsel %vm31_vm4, 1.0, %v497_v8  ;;  %v587_v43 = vsel %vm33_vm5, 1.0, %v497_v8 }
   0xc   :  { %v590_v44 = vsel %vm35_vm6, 1.0, %v497_v8  ;;  %v356_v45 = vmul.f32 10000.0, %v23_v35  ;;  %v358_v46 = vmul.f32 10000.0, %v25_v36  ;;  %v156_v47 = vmax.f32 %v152_v41, %v138_v33 }
   0xd   :  { %v360_v48 = vmul.f32 10000.0, %v27_v38  ;;  %v362_v49 = vmul.f32 10000.0, %v29_v39  ;;  %v119_v50 = vsub.f32 100.0, %v15_v30  ;;  %v121_v53 = vsub.f32 100.0, %v17_v31 }
   0xe   :  { %v72_v51 = vmul.f32 1.442695, %v356_v45  ;;  %v76_v52 = vmul.f32 1.442695, %v358_v46  ;;  %v123_v54 = vsub.f32 100.0, %v19_v34  ;;  %v160_v55 = vmax.f32 %v156_v47, %v140_v40 }
   0xf   :  { %v80_v56 = vmul.f32 1.442695, %v360_v48  ;;  %v84_v57 = vmul.f32 1.442695, %v362_v49  ;;  %v125_v58 = vsub.f32 100.0, %v21_v37  ;;  %v594_v63 = vsel %vm37_vm7, 1.0, %v497_v8 }
  0x10   :  { %449 = vpow2.f32 %v72_v51  ;;  %v127_v59 = vmul.f32 0.01010101, %v119_v50  ;;  %v129_v60 = vmul.f32 0.01010101, %v121_v53  ;;  %v131_v61 = vmul.f32 0.01010101, %v123_v54 }
  0x11   :  { %v162_v62 = vmax.f32 %v160_v55, 1e-10  ;;  %451 = vpow2.f32 %v76_v52  ;;  %v133_v0 = vmul.f32 0.01010101, %v125_v58 }
  0x12   :  { %453 = vpow2.f32 %v80_v56  ;;  %v135_v1 = vmul.f32 %v584_v42, %v127_v59  ;;  %v137_v2 = vmul.f32 %v587_v43, %v129_v60  ;;  %v139_v3 = vmul.f32 %v590_v44, %v131_v61 }
  0x13   :  { %v164_v4 = vsub.f32 %v134_v29, %v162_v62  ;;  %v166_v5 = vsub.f32 %v136_v32, %v162_v62  ;;  %v168_v6 = vsub.f32 %v138_v33, %v162_v62  ;;  %v170_v7 = vsub.f32 %v140_v40, %v162_v62 }
  0x14   :  { %v204_v12 = vsub.f32 1e-10, %v162_v62  ;;  %455 = vpow2.f32 %v84_v57  ;;  %v141_v13 = vmul.f32 %v594_v63, %v133_v0  ;;  %v153_v8 = vmax.f32 %v135_v1, %v137_v2 }
  0x15   :  { %v442_v11 = vpop.eup %441  ;;  %v172_v16 = vmul.f32 10000.0, %v164_v4  ;;  %v174_v17 = vmul.f32 10000.0, %v166_v5  ;;  %v176_v18 = vmul.f32 10000.0, %v168_v6  ;;  %v178_v22 = vmul.f32 10000.0, %v170_v7 }
  0x16   :  { %v444_v14 = vpop.eup %443  ;;  %v86_v15 = vadd.f32 1.0, %v442_v11  ;;  %v157_v23 = vmax.f32 %v153_v8, %v139_v3  ;;  %v206_v28 = vmul.f32 10000.0, %v204_v12 }
  0x17   :  { %v446_v19 = vpop.eup %445  ;;  %v88_v20 = vadd.f32 1.0, %v444_v14  ;;  %v180_v26 = vmul.f32 1.442695, %v172_v16  ;;  %v184_v30 = vmul.f32 1.442695, %v174_v17 }
  0x18   :  { %v448_v24 = vpop.eup %447  ;;  %v90_v25 = vadd.f32 1.0, %v446_v19  ;;  %457 = vrcp.f32 %v86_v15  ;;  %v188_v31 = vmul.f32 1.442695, %v176_v18  ;;  %v161_v32 = vmax.f32 %v157_v23, %v141_v13 }
  0x19   :  { %v92_v29 = vadd.f32 1.0, %v448_v24  ;;  %459 = vrcp.f32 %v88_v20  ;;  %v192_v33 = vmul.f32 1.442695, %v178_v22  ;;  %v208_v34 = vmul.f32 1.442695, %v206_v28 }
  0x1a   :  { %461 = vrcp.f32 %v90_v25  ;;  %v163_v35 = vmax.f32 %v161_v32, 1e-10 }
  0x1b   :  { %463 = vrcp.f32 %v92_v29 }
  0x1c   :  { %465 = vpow2.f32 %v180_v26  ;;  %v165_v37 = vsub.f32 %v135_v1, %v163_v35  ;;  %v167_v38 = vsub.f32 %v137_v2, %v163_v35  ;;  %v169_v39 = vsub.f32 %v139_v3, %v163_v35 }
  0x1d   :  { %467 = vpow2.f32 %v184_v30  ;;  %v450_v36 = vpop.eup %449  ;;  %v171_v45 = vsub.f32 %v141_v13, %v163_v35  ;;  %v205_v46 = vsub.f32 1e-10, %v163_v35 }
  0x1e   :  { %469 = vpow2.f32 %v188_v31  ;;  %v452_v40 = vpop.eup %451  ;;  %v87_v41 = vadd.f32 1.0, %v450_v36  ;;  %v173_v49 = vmul.f32 10000.0, %v165_v37  ;;  %v175_v50 = vmul.f32 10000.0, %v167_v38 }
  0x1f   :  { %471 = vpow2.f32 %v192_v33  ;;  %v454_v47 = vpop.eup %453  ;;  %v89_v48 = vadd.f32 1.0, %v452_v40  ;;  %v177_v52 = vmul.f32 10000.0, %v169_v39  ;;  %v207_v55 = vmul.f32 10000.0, %v205_v46 }
  0x20   :  { %473 = vpow2.f32 %v208_v34  ;;  %v91_v51 = vadd.f32 1.0, %v454_v47  ;;  %v182_v54 = vmul.f32 1.442695, %v173_v49  ;;  %v179_v57 = vmul.f32 10000.0, %v171_v45 }
  0x21   :  { %475 = vrcp.f32 %v87_v41  ;;  %v456_v53 = vpop.eup %455  ;;  %v186_v58 = vmul.f32 1.442695, %v175_v50  ;;  %v190_v59 = vmul.f32 1.442695, %v177_v52  ;;  %v210_v61 = vmul.f32 1.442695, %v207_v55 }
  0x22   :  { %477 = vrcp.f32 %v89_v48  ;;  %v93_v56 = vadd.f32 1.0, %v456_v53  ;;  %v194_v3 = vmul.f32 1.442695, %v179_v57  ;;  %v647_v57 = vld [vmem:[%s761_s2] sm:$0xff]  }
  0x23   :  { %479 = vrcp.f32 %v91_v51 }
  0x24   :  { %481 = vpow2.f32 %v182_v54 }
  0x25   :  { %v458_v60 = vpop.eup %457  ;;  %483 = vrcp.f32 %v93_v56 }
  0x26   :  { %v460_v62 = vpop.eup %459  ;;  %v110_v0 = vmul.f32 %v458_v60, %v543_v9  ;;  %485 = vpow2.f32 %v186_v58  ;;  %v658_v60 = vld [vmem:[%s761_s2 + $0x30] sm:$0xff]  }
  0x27   :  { %v462_v1 = vpop.eup %461  ;;  %v112_v2 = vmul.f32 %v460_v62, %v546_v10  ;;  %487 = vpow2.f32 %v190_v59  ;;  %v653_v59 = vld [vmem:[%s761_s2 + $0x18] sm:$0xff]   ;;  %v668_v62 = vld [vmem:[%s761_s2 + $0x8] sm:$0xff]  }
  0x28   :  { %v464_v4 = vpop.eup %463  ;;  %v114_v5 = vmul.f32 %v462_v1, %v549_v21  ;;  %v142_v6 = vsub.f32 1.0, %v110_v0  ;;  %489 = vpow2.f32 %v210_v61  ;;  %v663_v61 = vld [vmem:[%s761_s2 + $0x48] sm:$0xff]   ;;  %v678_v1 = vld [vmem:[%s761_s2 + $0x38] sm:$0xff]  }
  0x29   :  { %v466_v7 = vpop.eup %465  ;;  %v116_v11 = vmul.f32 %v464_v4, %v553_v27  ;;  %v144_v12 = vsub.f32 1.0, %v112_v2  ;;  %491 = vpow2.f32 %v194_v3  ;;  %v688_v3 = vld [vmem:[%s761_s2 + $0x28] sm:$0xff]   ;;  %v693_v4 = vld [vmem:[%s761_s2 + $0x40] sm:$0xff]  }
  0x2a   :  { %v468_v13 = vpop.eup %467  ;;  %v146_v8 = vsub.f32 1.0, %v114_v5  ;;  %v604_v10 = vmul.f32 %v466_v7, %v110_v0  ;;  %v673_v0 = vld [vmem:[%s761_s2 + $0x20] sm:$0xff]   ;;  %v407_v7 = vunpack.c.l.bf16 %v658_v60 }
  0x2b   :  { %v470_v14 = vpop.eup %469  ;;  %v148_v9 = vsub.f32 1.0, %v116_v11  ;;  %v150_v15 = vmul.f32 %v144_v12, %v142_v6  ;;  %v608_v19 = vmul.f32 %v468_v13, %v112_v2  ;;  %v683_v2 = vld [vmem:[%s761_s2 + $0x10] sm:$0xff]   ;;  %v395_v6 = vunpack.c.l.bf16 %v653_v59 }
  0x2c   :  { %v472_v16 = vpop.eup %471  ;;  %v612_v25 = vmul.f32 %v470_v14, %v114_v5  ;;  %v383_v5 = vunpack.c.l.bf16 %v647_v57  ;;  %v387_v12 = vunpack.c.l.bf16 %v668_v62  ;;  %v399_v13 = vunpack.c.l.bf16 %v673_v0 }
  0x2d   :  { %v606_v17 = vpop.eup %473  ;;  %v154_v18 = vmul.f32 %v150_v15, %v146_v8  ;;  %v202_v34 = vmul.f32 %v472_v16, %v116_v11  ;;  %v419_v11 = vunpack.c.l.bf16 %v663_v61  ;;  %v704_v8 = vld [vmem:[%s761_s2 + $0x50] sm:$0xff]   ;;  %v391_v15 = vunpack.c.l.bf16 %v683_v2 }
  0x2e   :  { %v476_v21 = vpop.eup %475  ;;  %v212_v20 = vmax.f32 %v606_v17, 1e-10  ;;  %v403_v16 = vunpack.c.l.bf16 %v688_v3 }
  0x2f   :  { %v478_v27 = vpop.eup %477  ;;  %v111_v22 = vmul.f32 %v476_v21, %v584_v42  ;;  %v158_v23 = vmul.f32 %v154_v18, %v148_v9  ;;  %v411_v9 = vunpack.c.l.bf16 %v678_v1  ;;  %v415_v18 = vunpack.c.l.bf16 %v693_v4  ;;  %v713_v21 = vld [vmem:[%s761_s2 + $0x58] sm:$0xff]  }
  0x30   :  { %v480_v24 = vpop.eup %479  ;;  %v214_v26 = vadd.f32 %v212_v20, %v604_v10  ;;  %v113_v28 = vmul.f32 %v478_v27, %v587_v43 }
  0x31   :  { %v482_v29 = vpop.eup %481  ;;  %v115_v30 = vmul.f32 %v480_v24, %v590_v44  ;;  %v333_v31 = vsub.f32 1.0, %v158_v23  ;;  %v143_v32 = vsub.f32 1.0, %v111_v22 }
  0x32   :  { %v484_v33 = vpop.eup %483  ;;  %v216_v35 = vadd.f32 %v214_v26, %v608_v19  ;;  %v145_v42 = vsub.f32 1.0, %v113_v28  ;;  %v625_v44 = vmul.f32 %v482_v29, %v111_v22  ;;  %v384_v26 = vunpack.c.h.bf16 %v647_v57 }
  0x33   :  { %v117_v36 = vmul.f32 %v484_v33, %v594_v63  ;;  %341 = vst [vmem:[%s760_s3 + $0x30] sm:$0xff] %v333_v31  ;;  %v147_v37 = vsub.f32 1.0, %v115_v30  ;;  %v486_v38 = vpop.eup %485  ;;  %v408_v29 = vunpack.c.h.bf16 %v658_v60 }
  0x34   :  { %v218_v43 = vadd.f32 %v216_v35, %v612_v25  ;;  %v151_v39 = vmul.f32 %v145_v42, %v143_v32  ;;  %v488_v40 = vpop.eup %487  ;;  %v629_v48 = vmul.f32 %v486_v38, %v113_v28  ;;  %v396_v28 = vunpack.c.h.bf16 %v653_v59 }
  0x35   :  { %v149_v41 = vsub.f32 1.0, %v117_v36  ;;  %v627_v45 = vpop.eup %489  ;;  %v632_v51 = vmul.f32 %v488_v40, %v115_v30  ;;  %v423_v30 = vunpack.c.l.bf16 %v704_v8  ;;  %v427_v35 = vunpack.c.l.bf16 %v713_v21 }
  0x36   :  { %v220_v46 = vadd.f32 %v218_v43, %v202_v34  ;;  %v155_v47 = vmul.f32 %v151_v39, %v147_v37  ;;  %v213_v63 = vmax.f32 %v627_v45, 1e-10  ;;  %v492_v49 = vpop.eup %491  ;;  %v420_v39 = vunpack.c.h.bf16 %v663_v61 }
  0x37   :  { %v637_v54 = vmul.f32 %v492_v49, %v117_v36  ;;  %v404_v59 = vunpack.c.h.bf16 %v688_v3 }
  0x38   :  { %493 = vrcp.f32 %v220_v46  ;;  %v159_v50 = vmul.f32 %v155_v47, %v149_v41  ;;  %v215_v52 = vadd.f32 %v213_v63, %v625_v44  ;;  %v388_v41 = vunpack.c.h.bf16 %v668_v62 }
  0x3a   :  { %v334_v53 = vsub.f32 1.0, %v159_v50  ;;  %v217_v55 = vadd.f32 %v215_v52, %v629_v48 }
  0x3c   :  { %342 = vst [vmem:[%s760_s3 + $0x38] sm:$0xff] %v334_v53  ;;  %v219_v56 = vadd.f32 %v217_v55, %v632_v51  ;;  %v400_v53 = vunpack.c.h.bf16 %v673_v0  ;;  %v412_v55 = vunpack.c.h.bf16 %v678_v1 }
  0x3e   :  { %v221_v58 = vadd.f32 %v219_v56, %v637_v54  ;;  %v424_v56 = vunpack.c.h.bf16 %v704_v8 }
  0x40   :  { %495 = vrcp.f32 %v221_v58 }
  0x45   :  { %v494_v14 = vpop.eup %493 }
  0x46   :  { %v224_v27 = vmul.f32 %v494_v14, %v604_v10  ;;  %v226_v22 = vmul.f32 %v494_v14, %v608_v19  ;;  %v228_v23 = vmul.f32 %v494_v14, %v612_v25  ;;  %v230_v24 = vmul.f32 %v494_v14, %v202_v34 }
  0x47   :  { %v325_v43 = vmul.f32 %v494_v14, %v212_v20  ;;  %v392_v20 = vunpack.c.h.bf16 %v683_v2  ;;  %v428_v2 = vunpack.c.h.bf16 %v713_v21 }
  0x48   :  { %v244_v31 = vmul.f32 %v383_v5, %v224_v27  ;;  %v263_v32 = vmul.f32 %v395_v6, %v226_v22  ;;  %v288_v33 = vmul.f32 %v407_v7, %v228_v23  ;;  %v313_v42 = vmul.f32 %v419_v11, %v230_v24 }
  0x49   :  { %v246_v10 = vmul.f32 %v387_v12, %v224_v27  ;;  %v265_v36 = vmul.f32 %v399_v13, %v226_v22  ;;  %v290_v19 = vmul.f32 %v411_v9, %v228_v23  ;;  %v248_v25 = vmul.f32 %v391_v15, %v224_v27 }
  0x4a   :  { %v269_v37 = vadd.f32 %v263_v32, %v244_v31  ;;  %v267_v34 = vmul.f32 %v403_v16, %v226_v22  ;;  %v292_v38 = vmul.f32 %v415_v18, %v228_v23  ;;  %v315_v47 = vmul.f32 %v423_v30, %v230_v24 }
  0x4b   :  { %v271_v40 = vadd.f32 %v265_v36, %v246_v10  ;;  %v317_v50 = vmul.f32 %v427_v35, %v230_v24  ;;  %v416_v7 = vunpack.c.h.bf16 %v693_v4 }
  0x4c   :  { %v294_v46 = vadd.f32 %v288_v33, %v269_v37  ;;  %v273_v49 = vadd.f32 %v267_v34, %v248_v25 }
  0x4d   :  { %v296_v52 = vadd.f32 %v290_v19, %v271_v40  ;;  %v496_v57 = vpop.eup %495 }
  0x4e   :  { %v319_v58 = vadd.f32 %v313_v42, %v294_v46  ;;  %v298_v17 = vadd.f32 %v292_v38, %v273_v49  ;;  %v225_v60 = vmul.f32 %v496_v57, %v625_v44  ;;  %v227_v61 = vmul.f32 %v496_v57, %v629_v48 }
  0x4f   :  { %v229_v62 = vmul.f32 %v496_v57, %v632_v51  ;;  %v231_v5 = vmul.f32 %v496_v57, %v637_v54  ;;  %v321_v6 = vadd.f32 %v315_v47, %v296_v52  ;;  %v326_v27 = vmul.f32 %v496_v57, %v213_v63 }
  0x50   :  { %v327_v0 = vadd.f32 %v325_v43, %v319_v58  ;;  %v323_v1 = vadd.f32 %v317_v50, %v298_v17  ;;  %v245_v11 = vmul.f32 %v384_v26, %v225_v60  ;;  %v264_v12 = vmul.f32 %v396_v28, %v227_v61 }
  0x51   :  { %v289_v13 = vmul.f32 %v408_v29, %v229_v62  ;;  %v329_v44 = vadd.f32 %v325_v43, %v321_v6  ;;  %v247_v48 = vmul.f32 %v388_v41, %v225_v60  ;;  %v266_v3 = vmul.f32 %v400_v53, %v227_v61 }
  0x52   :  { %335 = vst [vmem:[%s760_s3] sm:$0xff] %v327_v0  ;;  %v291_v51 = vmul.f32 %v412_v55, %v229_v62  ;;  %v270_v8 = vadd.f32 %v264_v12, %v245_v11  ;;  %v314_v54 = vmul.f32 %v420_v39, %v231_v5  ;;  %v331_v14 = vadd.f32 %v325_v43, %v323_v1 }
  0x53   :  { %v249_v9 = vmul.f32 %v392_v20, %v225_v60  ;;  %337 = vst [vmem:[%s760_s3 + $0x10] sm:$0xff] %v329_v44  ;;  %v272_v4 = vadd.f32 %v266_v3, %v247_v48  ;;  %v316_v15 = vmul.f32 %v424_v56, %v231_v5  ;;  %v268_v16 = vmul.f32 %v404_v59, %v227_v61 }
  0x54   :  { %v293_v18 = vmul.f32 %v416_v7, %v229_v62  ;;  %v295_v21 = vadd.f32 %v289_v13, %v270_v8  ;;  %339 = vst [vmem:[%s760_s3 + $0x20] sm:$0xff] %v331_v14  ;;  %v318_v24 = vmul.f32 %v428_v2, %v231_v5 }
  0x55   :  { %v297_v22 = vadd.f32 %v291_v51, %v272_v4  ;;  %v274_v23 = vadd.f32 %v268_v16, %v249_v9 }
  0x56   :  { %v320_v26 = vadd.f32 %v314_v54, %v295_v21 }
  0x57   :  { %v322_v28 = vadd.f32 %v316_v15, %v297_v22  ;;  %v299_v29 = vadd.f32 %v293_v18, %v274_v23 }
  0x58   :  { %v328_v30 = vadd.f32 %v326_v27, %v320_v26 }
  0x59   :  { %v330_v31 = vadd.f32 %v326_v27, %v322_v28  ;;  %v324_v32 = vadd.f32 %v318_v24, %v299_v29 }
  0x5a   :  { %336 = vst [vmem:[%s760_s3 + $0x8] sm:$0xff] %v328_v30 }
  0x5b   :  { %338 = vst [vmem:[%s760_s3 + $0x18] sm:$0xff] %v330_v31  ;;  %v332_v45 = vadd.f32 %v326_v27, %v324_v32 }
  0x5d   :  { %340 = vst [vmem:[%s760_s3 + $0x28] sm:$0xff] %v332_v45 }

</bundles_post_ra>
